<compile_context>
chip_gen: v6e
topology: v6e:2x2x1
jax: 0.10.0
libtpu: 0.0.40
codegen_flags: <defaults>
</compile_context>

<pallas_src>
import functools
import math

import jax
import jax.numpy as jnp
from jax import lax
from jax.experimental import pallas as pl
from jax.experimental.pallas import tpu as pltpu


def lora_linear_kernel(x_ref, w_ref, a_ref, b_ref, o_ref, acc_ref, u_ref,
                       *, scaling):
    # Grid: (i over M tiles, j over N=out tiles, k over K=in tiles).
    # k is the reduction axis; acc (tm, tn) and u (tm, r) live in VMEM scratch
    # across the k loop.  u is (re)accumulated per (i, j) so the kernel stays
    # correct under any megacore sharding of the parallel i / j axes.
    k = pl.program_id(2)
    nk = pl.num_programs(2)

    @pl.when(k == 0)
    def _():
        acc_ref[...] = jnp.zeros_like(acc_ref)
        u_ref[...] = jnp.zeros_like(u_ref)

    x = x_ref[...]                                     # (tm, tk)

    # Base path: partial x @ W.T for this K tile.  Contract last dims of both
    # operands (W keeps its PyTorch (out, in) layout) -> no XLU transpose.
    acc_ref[...] += lax.dot_general(
        x, w_ref[...],
        dimension_numbers=(((1,), (1,)), ((), ())),
        preferred_element_type=jnp.float32,
    )

    # LoRA activation path: accumulate u = x @ A.T  (shape (tm, r)).
    # a_ref holds this K tile of A.T, shape (tk, r), delivered via BlockSpec.
    u_ref[...] += lax.dot_general(
        x, a_ref[...],
        dimension_numbers=(((1,), (0,)), ((), ())),
        preferred_element_type=jnp.float32,
    )

    @pl.when(k == nk - 1)
    def _():
        # b_ref holds this output tile's rows of B, shape (tn, r).
        u_s = (u_ref[...] * scaling).astype(b_ref.dtype)             # (tm, r)
        lora = lax.dot_general(
            u_s, b_ref[...],
            dimension_numbers=(((1,), (1,)), ((), ())),
            preferred_element_type=jnp.float32,
        )                                                            # (tm, tn)
        o_ref[...] = (acc_ref[...] + lora).astype(o_ref.dtype)


def lora_linear(x, weight, lora_a, lora_b, scaling, *,
                tm=256, tn=256, tk=512,
                compute_dtype=jnp.bfloat16,
                vmem_limit_bytes=48 * 1024 * 1024):
    M, K = x.shape
    N, K2 = weight.shape
    r = lora_a.shape[0]
    assert K == K2 and lora_a.shape == (r, K) and lora_b.shape == (N, r)

    # Cap tiles at the array extents; cap tm (don't take all of M) so x / acc /
    # out tiles stay bounded in VMEM and tn / tk can grow instead.
    tm = min(tm, M)
    tn = min(tn, N)
    tk = min(tk, K)
    # TODO(synk): ragged shapes would need padding or Element/BoundedSlice.
    assert M % tm == 0 and N % tn == 0 and K % tk == 0

    out_dtype = x.dtype
    cdt = compute_dtype

    x_c = x.astype(cdt)
    w_c = weight.astype(cdt)              # keep PyTorch (out, in) layout
    a_t = lora_a.T.astype(cdt)            # (K, r): tiny per-tile DMAs
    b_c = lora_b.astype(cdt)              # (N, r): tiny per-j-tile DMAs

    grid = (M // tm, N // tn, K // tk)

    kernel = functools.partial(lora_linear_kernel, scaling=float(scaling))

    return pl.pallas_call(
        kernel,
        out_shape=jax.ShapeDtypeStruct((M, N), out_dtype),
        grid_spec=pltpu.PrefetchScalarGridSpec(
            num_scalar_prefetch=0,
            grid=grid,
            in_specs=[
                pl.BlockSpec((tm, tk), lambda i, j, k: (i, k)),   # x
                pl.BlockSpec((tn, tk), lambda i, j, k: (j, k)),   # W (out, in)
                pl.BlockSpec((tk, r), lambda i, j, k: (k, 0)),    # A.T tile
                pl.BlockSpec((tn, r), lambda i, j, k: (j, 0)),    # B tile
            ],
            out_specs=pl.BlockSpec((tm, tn), lambda i, j, k: (i, j)),
            scratch_shapes=[
                pltpu.VMEM((tm, tn), jnp.float32),   # base accumulator
                pltpu.VMEM((tm, r), jnp.float32),    # LoRA u = x @ A.T
            ],
        ),
        compiler_params=pltpu.CompilerParams(
            dimension_semantics=("parallel", "parallel", "arbitrary"),
            vmem_limit_bytes=vmem_limit_bytes,
        ),
    )(x_c, w_c, a_t, b_c)


if __name__ == "__main__":
    # Small, deterministic example consistent with LoRALinear(in=256, out=128, r=4).
    M, in_features, out_features, r, lora_alpha = 16, 256, 128, 4, 32
    scaling = lora_alpha / r

    key = jax.random.PRNGKey(0)
    k_x, k_w, k_a, k_b = jax.random.split(key, 4)

    # Kaiming-uniform(a=sqrt(5)) for the frozen weight: bound = 1/sqrt(fan_in).
    bound = 1.0 / math.sqrt(in_features)
    weight = jax.random.uniform(
        k_w, (out_features, in_features), jnp.float32, -bound, bound)
    # Module inits lora_a / lora_b to zeros; use small random values here so
    # the LoRA path is actually exercised (deterministic, in-script).
    lora_a = 0.01 * jax.random.normal(k_a, (r, in_features), jnp.float32)
    lora_b = 0.01 * jax.random.normal(k_b, (out_features, r), jnp.float32)

    x = jax.random.normal(k_x, (M, in_features), jnp.float32)

    # Pure-JAX reference of the fused forward.
    w_eff = weight + scaling * (lora_b @ lora_a)
    y_ref = x @ w_eff.T

    # 1) f32 compute path: tight check of the kernel structure / LoRA refactor.
    y_f32 = jax.block_until_ready(
        lora_linear(x, weight, lora_a, lora_b, scaling,
                    compute_dtype=jnp.float32))
    assert y_f32.shape == (M, out_features)
    assert jnp.allclose(y_f32, y_ref, atol=1e-4, rtol=1e-4), "f32 mismatch"

    # 2) Default bf16 compute path (production config): looser tolerance for
    #    bf16 input rounding (accumulation stays f32).
    y_bf16 = jax.block_until_ready(
        lora_linear(x, weight, lora_a, lora_b, scaling))
    assert y_bf16.shape == (M, out_features)
    assert jnp.allclose(y_bf16, y_ref, atol=3e-2, rtol=3e-2), "bf16 mismatch"

    print("KERNEL_OK")
</pallas_src>

<mosaic_0001>
module attributes {stable_mosaic.version = 11 : i64} {
  func.func @lora_linear_kernel(%arg0: i32, %arg1: i32, %arg2: i32, %arg3: memref<16x256xf32, #tpu.memory_space<vmem>>, %arg4: memref<128x256xf32, #tpu.memory_space<vmem>>, %arg5: memref<256x4xf32, #tpu.memory_space<vmem>>, %arg6: memref<128x4xf32, #tpu.memory_space<vmem>>, %arg7: memref<16x128xf32, #tpu.memory_space<vmem>>, %arg8: memref<16x128xf32, #tpu.memory_space<vmem>>, %arg9: memref<16x4xf32, #tpu.memory_space<vmem>>) attributes {dimension_semantics = [#tpu.dimension_semantics<parallel>, #tpu.dimension_semantics<parallel>, #tpu.dimension_semantics<arbitrary>], iteration_bounds = array<i64: 1, 1, 1>, scalar_prefetch = 0 : i64, scratch_operands = 2 : i64, tpu.core_type = #tpu.core_type<tc>, window_params = [{transform_indices = @transform_0, window_bounds = array<i64: 16, 256>}, {transform_indices = @transform_1, window_bounds = array<i64: 128, 256>}, {transform_indices = @transform_2, window_bounds = array<i64: 256, 4>}, {transform_indices = @transform_3, window_bounds = array<i64: 128, 4>}, {transform_indices = @transform_4, window_bounds = array<i64: 16, 128>}]} {
    %c0_i32 = arith.constant 0 : i32
    %0 = arith.cmpi eq, %arg2, %c0_i32 : i32
    %1 = arith.extui %0 : i1 to i32
    %c0_i32_0 = arith.constant 0 : i32
    %2 = arith.cmpi ne, %1, %c0_i32_0 : i32
    scf.if %2 {
      %cst_17 = arith.constant 0.000000e+00 : f32
      %17 = vector.broadcast %cst_17 : f32 to vector<16x128xf32>
      %c0_18 = arith.constant 0 : index
      %c0_19 = arith.constant 0 : index
      %18 = vector.load %arg8[%c0_18, %c0_19] : memref<16x128xf32, #tpu.memory_space<vmem>>, vector<16x128xf32>
      tpu.vector_store %arg8[%c0_18, %c0_19], %17 {strides = array<i32>} : memref<16x128xf32, #tpu.memory_space<vmem>>, vector<16x128xf32>,
      %cst_20 = arith.constant 0.000000e+00 : f32
      %19 = vector.broadcast %cst_20 : f32 to vector<16x4xf32>
      %c0_21 = arith.constant 0 : index
      %c0_22 = arith.constant 0 : index
      %20 = vector.load %arg9[%c0_21, %c0_22] : memref<16x4xf32, #tpu.memory_space<vmem>>, vector<16x4xf32>
      tpu.vector_store %arg9[%c0_21, %c0_22], %19 {strides = array<i32>} : memref<16x4xf32, #tpu.memory_space<vmem>>, vector<16x4xf32>,
    } else {
    }
    %c0 = arith.constant 0 : index
    %c0_1 = arith.constant 0 : index
    %3 = vector.load %arg3[%c0, %c0_1] : memref<16x256xf32, #tpu.memory_space<vmem>>, vector<16x256xf32>
    %c0_2 = arith.constant 0 : index
    %c0_3 = arith.constant 0 : index
    %4 = vector.load %arg8[%c0_2, %c0_3] : memref<16x128xf32, #tpu.memory_space<vmem>>, vector<16x128xf32>
    %c0_4 = arith.constant 0 : index
    %c0_5 = arith.constant 0 : index
    %5 = vector.load %arg4[%c0_4, %c0_5] : memref<128x256xf32, #tpu.memory_space<vmem>>, vector<128x256xf32>
    %cst = arith.constant dense<0.000000e+00> : vector<16x128xf32>
    %6 = tpu.matmul %3, %5, %cst {dimension_numbers = #tpu.dot_dimension_numbers<[1], [1], [0], [0], [0, 0, 1, 0], [], []>} : vector<16x256xf32>, vector<128x256xf32>, vector<16x128xf32> -> vector<16x128xf32>
    %7 = arith.addf %4, %6 : vector<16x128xf32>
    %c0_6 = arith.constant 0 : index
    %c0_7 = arith.constant 0 : index
    %8 = vector.load %arg8[%c0_6, %c0_7] : memref<16x128xf32, #tpu.memory_space<vmem>>, vector<16x128xf32>
    tpu.vector_store %arg8[%c0_6, %c0_7], %7 {strides = array<i32>} : memref<16x128xf32, #tpu.memory_space<vmem>>, vector<16x128xf32>,
    %c0_8 = arith.constant 0 : index
    %c0_9 = arith.constant 0 : index
    %9 = vector.load %arg9[%c0_8, %c0_9] : memref<16x4xf32, #tpu.memory_space<vmem>>, vector<16x4xf32>
    %c0_10 = arith.constant 0 : index
    %c0_11 = arith.constant 0 : index
    %10 = vector.load %arg5[%c0_10, %c0_11] : memref<256x4xf32, #tpu.memory_space<vmem>>, vector<256x4xf32>
    %cst_12 = arith.constant dense<0.000000e+00> : vector<16x4xf32>
    %11 = tpu.matmul %3, %10, %cst_12 {dimension_numbers = #tpu.dot_dimension_numbers<[1], [0], [0], [1], [0, 0, 1, 1], [], []>} : vector<16x256xf32>, vector<256x4xf32>, vector<16x4xf32> -> vector<16x4xf32>
    %12 = arith.addf %9, %11 : vector<16x4xf32>
    %c0_13 = arith.constant 0 : index
    %c0_14 = arith.constant 0 : index
    %13 = vector.load %arg9[%c0_13, %c0_14] : memref<16x4xf32, #tpu.memory_space<vmem>>, vector<16x4xf32>
    tpu.vector_store %arg9[%c0_13, %c0_14], %12 {strides = array<i32>} : memref<16x4xf32, #tpu.memory_space<vmem>>, vector<16x4xf32>,
    %c0_i32_15 = arith.constant 0 : i32
    %14 = arith.cmpi eq, %arg2, %c0_i32_15 : i32
    %15 = arith.extui %14 : i1 to i32
    %c0_i32_16 = arith.constant 0 : i32
    %16 = arith.cmpi ne, %15, %c0_i32_16 : i32
    scf.if %16 {
      %c0_17 = arith.constant 0 : index
      %c0_18 = arith.constant 0 : index
      %17 = vector.load %arg9[%c0_17, %c0_18] : memref<16x4xf32, #tpu.memory_space<vmem>>, vector<16x4xf32>
      %cst_19 = arith.constant 8.000000e+00 : f32
      %18 = vector.broadcast %cst_19 : f32 to vector<16x4xf32>
      %19 = arith.mulf %17, %18 : vector<16x4xf32>
      %c0_20 = arith.constant 0 : index
      %c0_21 = arith.constant 0 : index
      %20 = vector.load %arg6[%c0_20, %c0_21] : memref<128x4xf32, #tpu.memory_space<vmem>>, vector<128x4xf32>
      %cst_22 = arith.constant dense<0.000000e+00> : vector<16x128xf32>
      %21 = tpu.matmul %19, %20, %cst_22 {dimension_numbers = #tpu.dot_dimension_numbers<[1], [1], [0], [0], [0, 0, 1, 0], [], []>} : vector<16x4xf32>, vector<128x4xf32>, vector<16x128xf32> -> vector<16x128xf32>
      %c0_23 = arith.constant 0 : index
      %c0_24 = arith.constant 0 : index
      %22 = vector.load %arg8[%c0_23, %c0_24] : memref<16x128xf32, #tpu.memory_space<vmem>>, vector<16x128xf32>
      %23 = arith.addf %22, %21 : vector<16x128xf32>
      %c0_25 = arith.constant 0 : index
      %c0_26 = arith.constant 0 : index
      %24 = vector.load %arg7[%c0_25, %c0_26] : memref<16x128xf32, #tpu.memory_space<vmem>>, vector<16x128xf32>
      tpu.vector_store %arg7[%c0_25, %c0_26], %23 {strides = array<i32>} : memref<16x128xf32, #tpu.memory_space<vmem>>, vector<16x128xf32>,
    } else {
    }
    return
  }
  func.func @transform_0(%arg0: i32, %arg1: i32, %arg2: i32) -> (i32, i32) {
    %c0_i32 = arith.constant 0 : i32
    return %arg0, %arg2 : i32, i32
  }
  func.func @transform_1(%arg0: i32, %arg1: i32, %arg2: i32) -> (i32, i32) {
    %c0_i32 = arith.constant 0 : i32
    return %arg1, %arg2 : i32, i32
  }
  func.func @transform_2(%arg0: i32, %arg1: i32, %arg2: i32) -> (i32, i32) {
    %c0_i32 = arith.constant 0 : i32
    %c0_i32_0 = arith.constant 0 : i32
    return %arg2, %c0_i32 : i32, i32
  }
  func.func @transform_3(%arg0: i32, %arg1: i32, %arg2: i32) -> (i32, i32) {
    %c0_i32 = arith.constant 0 : i32
    %c0_i32_0 = arith.constant 0 : i32
    return %arg1, %c0_i32 : i32, i32
  }
  func.func @transform_4(%arg0: i32, %arg1: i32, %arg2: i32) -> (i32, i32) {
    %c0_i32 = arith.constant 0 : i32
    return %arg0, %arg1 : i32, i32
  }
}

</mosaic_0001>

<bundles_post_ra>
// kernel: tpu_custom_call.1
= control target key start
LH: loop header
LB: loop body
LE: loop exit
PB: predicated region body
PF: predicated region fallthrough
CT: control target
= control target key end

     0   :  { %s901_s0 = inlined_call_operand.vmem [shape: f32[16,256], index: 0, kind: input, shape index: {}]   ;;  %s902_s1 = inlined_call_operand.vmem [shape: f32[128,256], index: 1, kind: input, shape index: {}]   ;;  %s903_s2 = inlined_call_operand.vmem [shape: f32[256,4], index: 2, kind: input, shape index: {}]   ;;  %s904_s3 = inlined_call_operand.vmem [shape: f32[128,4], index: 3, kind: input, shape index: {}]   ;;  %s905_s4 = inlined_call_operand.hbm [shape: f32[16,128], index: 4, kind: output, shape index: {}]  }
   0x1   :  { %v177_v0 = vld [vmem:[%s903_s2 + $0xf8] sm:$0xff]  ;;  %v176_v2 = vld [vmem:[%s903_s2 + $0xf0] sm:$0xff]  ;;  %v175_v4 = vld [vmem:[%s903_s2 + $0xe8] sm:$0xff] }
   0x2   :  { %v161_v1 = vld [vmem:[%s903_s2 + $0x78] sm:$0xff]  ;;  %450 = vmatprep.subr.mxu1 %v177_v0  ;;  %v160_v3 = vld [vmem:[%s903_s2 + $0x70] sm:$0xff]  ;;  %v159_v5 = vld [vmem:[%s903_s2 + $0x68] sm:$0xff] }
   0x3   :  { %451 = vmatpush3.msra.mxu1 %v161_v1  ;;  %v174_v6 = vld [vmem:[%s903_s2 + $0xe0] sm:$0xff]  ;;  %v173_v8 = vld [vmem:[%s903_s2 + $0xd8] sm:$0xff]  ;;  %v172_v10 = vld [vmem:[%s903_s2 + $0xd0] sm:$0xff] }
   0x4   :  { %452 = vmatprep.subr.mxu1 %v176_v2  ;;  %v158_v7 = vld [vmem:[%s903_s2 + $0x60] sm:$0xff]  ;;  %v157_v9 = vld [vmem:[%s903_s2 + $0x58] sm:$0xff]  ;;  %v156_v11 = vld [vmem:[%s903_s2 + $0x50] sm:$0xff] }
   0x5   :  { %453 = vmatpush3.msra.mxu1 %v160_v3  ;;  %v171_v12 = vld [vmem:[%s903_s2 + $0xc8] sm:$0xff]  ;;  %v170_v15 = vld [vmem:[%s903_s2 + $0xc0] sm:$0xff]  ;;  %v64_v16 = vld [vmem:[%s902_s1 + $0xf8] sm:$0xff] }
   0x6   :  { %454 = vmatprep.subr.mxu1 %v175_v4  ;;  %v28_v13 = vld [vmem:[%s901_s0 + $0x8] sm:$0xff]  ;;  %v63_v17 = vld [vmem:[%s902_s1 + $0xf0] sm:$0xff]  ;;  %v154_v19 = vld [vmem:[%s903_s2 + $0x40] sm:$0xff]  ;;  %65 = vmatprep.subr.mxu0 %v64_v16 }
   0x7   :  { %455 = vmatpush3.msra.mxu1 %v159_v5  ;;  %v155_v14 = vld [vmem:[%s903_s2 + $0x48] sm:$0xff]  ;;  %242 = vmatprep.mubr.f32.mxu1 %v28_v13  ;;  %v169_v20 = vld [vmem:[%s903_s2 + $0xb8] sm:$0xff]  ;;  %v61_v22 = vld [vmem:[%s902_s1 + $0xe0] sm:$0xff] }
   0x8   :  { %456 = vmatprep.subr.mxu1 %v174_v6  ;;  %v62_v18 = vld [vmem:[%s902_s1 + $0xe8] sm:$0xff]  ;;  %129 = vmatprep.mubr.f32.mxu0 %v28_v13  ;;  %v153_v21 = vld [vmem:[%s903_s2 + $0x38] sm:$0xff]  ;;  %v168_v23 = vld [vmem:[%s903_s2 + $0xb0] sm:$0xff] }
   0x9   :  { %457 = vmatpush3.msra.mxu1 %v158_v7  ;;  %66 = vmatpush1.xpose.msra.mxu0 %v63_v17  ;;  %v60_v24 = vld [vmem:[%s902_s1 + $0xd8] sm:$0xff]  ;;  %v152_v25 = vld [vmem:[%s903_s2 + $0x30] sm:$0xff]  ;;  %v167_v26 = vld [vmem:[%s903_s2 + $0xa8] sm:$0xff] }
   0xa   :  { %458 = vmatprep.subr.mxu1 %v173_v8  ;;  %67 = vmatprep.subr.mxu0 %v62_v18  ;;  %v151_v27 = vld [vmem:[%s903_s2 + $0x28] sm:$0xff]  ;;  %v59_v28 = vld [vmem:[%s902_s1 + $0xd0] sm:$0xff]  ;;  %v166_v29 = vld [vmem:[%s903_s2 + $0xa0] sm:$0xff] }
   0xb   :  { %459 = vmatpush3.msra.mxu1 %v157_v9  ;;  %v58_v30 = vld [vmem:[%s902_s1 + $0xc8] sm:$0xff]  ;;  %v150_v31 = vld [vmem:[%s903_s2 + $0x20] sm:$0xff]  ;;  %v165_v32 = vld [vmem:[%s903_s2 + $0x98] sm:$0xff] }
   0xc   :  { %460 = vmatprep.subr.mxu1 %v172_v10  ;;  %v149_v33 = vld [vmem:[%s903_s2 + $0x18] sm:$0xff]  ;;  %v57_v34 = vld [vmem:[%s902_s1 + $0xc0] sm:$0xff] }
   0xd   :  { %461 = vmatpush3.msra.mxu1 %v156_v11  ;;  %68 = vmatpush1.xpose.msra.mxu0 %v61_v22 }
   0xe   :  { %462 = vmatprep.subr.mxu1 %v171_v12  ;;  %69 = vmatprep.subr.mxu0 %v60_v24 }
   0xf   :  { %463 = vmatpush3.msra.mxu1 %v155_v14 }
  0x10   :  { %464 = vmatprep.subr.mxu1 %v170_v15 }
  0x11   :  { %465 = vmatpush3.msra.mxu1 %v154_v19  ;;  %70 = vmatpush1.xpose.msra.mxu0 %v59_v28 }
  0x12   :  { %466 = vmatprep.subr.mxu1 %v169_v20  ;;  %71 = vmatprep.subr.mxu0 %v58_v30 }
  0x13   :  { %467 = vmatpush3.msra.mxu1 %v153_v21 }
  0x14   :  { %468 = vmatprep.subr.mxu1 %v168_v23 }
  0x15   :  { %469 = vmatpush3.msra.mxu1 %v152_v25 }
  0x16   :  { %470 = vmatprep.subr.mxu1 %v167_v26 }
  0x17   :  { %471 = vmatpush3.msra.mxu1 %v151_v27 }
  0x18   :  { %472 = vmatprep.subr.mxu1 %v166_v29 }
  0x19   :  { %9 = vsyncpa [#allocation5], 0  ;;  %473 = vmatpush3.msra.mxu1 %v150_v31  ;;  %v164_v35 = vld [vmem:[%s903_s2 + $0x90] sm:$0xff]  ;;  %v56_v36 = vld [vmem:[%s902_s1 + $0xb8] sm:$0xff]  ;;  %72 = vmatpush1.xpose.msra.mxu0 %v57_v34  ;;  %vm24_vm0 = vcmask 31744   ;;  %v567_v7 = vmov 0.0  }
  0x1a   :  { %474 = vmatprep.subr.mxu1 %v165_v32  ;;  %v148_v37 = vld [vmem:[%s903_s2 + $0x10] sm:$0xff]  ;;  %v163_v38 = vld [vmem:[%s903_s2 + $0x88] sm:$0xff]  ;;  %73 = vmatprep.subr.mxu0 %v56_v36  ;;  %v162_v41 = vld [vmem:[%s903_s2 + $0x80] sm:$0xff]  ;;  %25 = vst.msk [vmem:[#allocation3] sm:$0xff] %vm24_vm0, %v567_v7 }
  0x1b   :  { %475 = vmatpush3.msra.mxu1 %v149_v33  ;;  %v147_v39 = vld [vmem:[%s903_s2 + $0x8] sm:$0xff]  ;;  %v55_v40 = vld [vmem:[%s902_s1 + $0xb0] sm:$0xff]  ;;  %v146_v43 = vld [vmem:[%s903_s2] sm:$0xff]  ;;  %26 = vst.msk [vmem:[#allocation3 + $0x8] sm:$0xff] %vm24_vm0, %v567_v7 }
  0x1c   :  { %476 = vmatprep.subr.mxu1 %v164_v35  ;;  %v54_v42 = vld [vmem:[%s902_s1 + $0xa8] sm:$0xff]  ;;  %v731_v44 = vld [vmem:[%s901_s0] sm:$0xff]  ;;  %v280_v45 = vld [vmem:[%s904_s3 + $0x78] sm:$0xff] }
  0x1d   :  { %477 = vmatpush3.msra.mxu1 %v148_v37  ;;  %74 = vmatpush1.xpose.msra.mxu0 %v55_v40  ;;  %v739_v46 = vld [vmem:[%s901_s0 + $0x18] sm:$0xff]  ;;  %v279_v47 = vld [vmem:[%s904_s3 + $0x70] sm:$0xff]  ;;  %v53_v48 = vld [vmem:[%s902_s1 + $0xa0] sm:$0xff] }
  0x1e   :  { %478 = vmatprep.subr.mxu1 %v163_v38  ;;  %75 = vmatprep.subr.mxu0 %v54_v42  ;;  %v52_v49 = vld [vmem:[%s902_s1 + $0x98] sm:$0xff]  ;;  %v756_v50 = vld [vmem:[%s901_s0 + $0x10] sm:$0xff]  ;;  %v278_v51 = vld [vmem:[%s904_s3 + $0x68] sm:$0xff] }
  0x1f   :  { %479 = vmatpush3.msra.mxu1 %v147_v39  ;;  %v51_v52 = vld [vmem:[%s902_s1 + $0x90] sm:$0xff]  ;;  %v50_v53 = vld [vmem:[%s902_s1 + $0x88] sm:$0xff]  ;;  %v277_v54 = vld [vmem:[%s904_s3 + $0x60] sm:$0xff] }
  0x20   :  { %480 = vmatprep.subr.mxu1 %v162_v41  ;;  %v49_v55 = vld [vmem:[%s902_s1 + $0x80] sm:$0xff]  ;;  %v48_v56 = vld [vmem:[%s902_s1 + $0x78] sm:$0xff]  ;;  %v47_v58 = vld [vmem:[%s902_s1 + $0x70] sm:$0xff] }
  0x21   :  { %481 = vmatpush3.msra.mxu1 %v146_v43  ;;  %76 = vmatpush1.xpose.msra.mxu0 %v53_v48  ;;  %v276_v57 = vld [vmem:[%s904_s3 + $0x58] sm:$0xff]  ;;  %v46_v59 = vld [vmem:[%s902_s1 + $0x68] sm:$0xff]  ;;  %v275_v60 = vld [vmem:[%s904_s3 + $0x50] sm:$0xff] }
  0x22   :  { %243 = vmatmul.mubr.f32.vlgmr.msra.gmra.mxu1 %v731_v44  ;;  %506 = vmatprep.subr.msk.mxu1 %vm24_vm0, %v280_v45  ;;  %v45_v61 = vld [vmem:[%s902_s1 + $0x60] sm:$0xff]  ;;  %v44_v62 = vld [vmem:[%s902_s1 + $0x58] sm:$0xff]  ;;  %v274_v63 = vld [vmem:[%s904_s3 + $0x48] sm:$0xff] }
  0x23   :  { %247 = vmatprep.mubr.f32.mxu1 %v739_v46  ;;  %507 = vmatpush3.xpose.msk.msra.mxu1 %vm24_vm0, %v280_v45  ;;  %v43_v0 = vld [vmem:[%s902_s1 + $0x50] sm:$0xff]  ;;  %v42_v1 = vld [vmem:[%s902_s1 + $0x48] sm:$0xff]  ;;  %v273_v2 = vld [vmem:[%s904_s3 + $0x40] sm:$0xff] }
  0x24   :  { %508 = vmatprep.subr.msk.mxu1 %vm24_vm0, %v279_v47  ;;  %77 = vmatprep.subr.mxu0 %v52_v49  ;;  %v41_v3 = vld [vmem:[%s902_s1 + $0x40] sm:$0xff]  ;;  %v272_v4 = vld [vmem:[%s904_s3 + $0x38] sm:$0xff]  ;;  %v271_v5 = vld [vmem:[%s904_s3 + $0x30] sm:$0xff] }
  0x25   :  { %78 = vmatpush1.xpose.msra.mxu0 %v51_v52  ;;  %v270_v6 = vld [vmem:[%s904_s3 + $0x28] sm:$0xff]  ;;  %v40_v8 = vld [vmem:[%s902_s1 + $0x38] sm:$0xff]  ;;  %v269_v9 = vld [vmem:[%s904_s3 + $0x20] sm:$0xff] }
  0x26   :  { %248 = vmatmul.mubr.f32.gmra.mxu1 %v756_v50  ;;  %79 = vmatprep.subr.mxu0 %v50_v53  ;;  %v39_v10 = vld [vmem:[%s902_s1 + $0x30] sm:$0xff]  ;;  %v38_v11 = vld [vmem:[%s902_s1 + $0x28] sm:$0xff]  ;;  %v268_v12 = vld [vmem:[%s904_s3 + $0x18] sm:$0xff] }
  0x27   :  { %509 = vmatpush3.xpose.msk.msra.mxu1 %vm24_vm0, %v279_v47  ;;  %v37_v13 = vld [vmem:[%s902_s1 + $0x20] sm:$0xff]  ;;  %v36_v14 = vld [vmem:[%s902_s1 + $0x18] sm:$0xff]  ;;  %v267_v15 = vld [vmem:[%s904_s3 + $0x10] sm:$0xff] }
  0x28   :  { %510 = vmatprep.subr.msk.mxu1 %vm24_vm0, %v278_v51  ;;  %v35_v16 = vld [vmem:[%s902_s1 + $0x10] sm:$0xff]  ;;  %v34_v17 = vld [vmem:[%s902_s1 + $0x8] sm:$0xff]  ;;  %v33_v19 = vld [vmem:[%s902_s1] sm:$0xff]  ;;  %s568_s1 = smov [#allocation4]  }
  0x29   :  { %80 = vmatpush1.xpose.msra.mxu0 %v49_v55  ;;  %v266_v18 = vld [vmem:[%s904_s3 + $0x8] sm:$0xff]  ;;  %v265_v20 = vld [vmem:[%s904_s3] sm:$0xff]  ;;  %s421_s3 = sshll.u32 %s568_s1, 4  ;;  %s422_s3 = int_to_ptr.vmem [resolvable:$true] %s421_s3 }
  0x2a   :  { %81 = vmatprep.subr.mxu0 %v48_v56  ;;  %v144_v22 = vld [vmem:[#allocation3] sm:$0xff]  ;;  %v145_v27 = vld [vmem:[#allocation3 + $0x8] sm:$0xff]  ;;  %s545_s21 = scalar_lea.vmem %s422_s3, 256  ;;  %p550_p1 = scmp.lt.s32.totalorder %s422_s3, %s422_s3 }
  0x2b   :  { %511 = vmatpush3.xpose.msk.msra.mxu1 %vm24_vm0, %v278_v51  ;;  %p546_p0 = scmp.ne.s32.totalorder %s422_s3, %s545_s21  ;;  %p551_p2 = scmp.lt.s32.totalorder %s545_s21, %s545_s21 }
  0x2c   :  { %512 = vmatprep.subr.msk.mxu1 %vm24_vm0, %v277_v54 }
  0x2d   :  { %82 = vmatpush1.xpose.msra.mxu0 %v47_v58  ;;  %p552_p3 = por %p551_p2, %p550_p1 }
  0x2e   :  { %83 = vmatprep.subr.mxu0 %v46_v59 }
  0x2f   :  { %513 = vmatpush3.xpose.msk.msra.mxu1 %vm24_vm0, %v277_v54  ;;  %p553_p4 = pnand %p552_p3, %p546_p0 }
  0x30   :  { %514 = vmatprep.subr.msk.mxu1 %vm24_vm0, %v276_v57 }
  0x31   :  { %84 = vmatpush1.xpose.msra.mxu0 %v45_v61 }
  0x32   :  { %85 = vmatprep.subr.mxu0 %v44_v62 }
  0x33   :  { %515 = vmatpush3.xpose.msk.msra.mxu1 %vm24_vm0, %v276_v57 }
  0x34   :  { %516 = vmatprep.subr.msk.mxu1 %vm24_vm0, %v275_v60 }
  0x35   :  { %86 = vmatpush1.xpose.msra.mxu0 %v43_v0 }
  0x36   :  { %87 = vmatprep.subr.mxu0 %v42_v1 }
  0x37   :  { %517 = vmatpush3.xpose.msk.msra.mxu1 %vm24_vm0, %v275_v60 }
  0x38   :  { %518 = vmatprep.subr.msk.mxu1 %vm24_vm0, %v274_v63 }
  0x39   :  { %88 = vmatpush1.xpose.msra.mxu0 %v41_v3 }
  0x3a   :  { %89 = vmatprep.subr.mxu0 %v40_v8 }
  0x3b   :  { %519 = vmatpush3.xpose.msk.msra.mxu1 %vm24_vm0, %v274_v63 }
  0x3c   :  { %520 = vmatprep.subr.msk.mxu1 %vm24_vm0, %v273_v2 }
  0x3d   :  { %90 = vmatpush1.xpose.msra.mxu0 %v39_v10 }
  0x3e   :  { %91 = vmatprep.subr.mxu0 %v38_v11 }
  0x3f   :  { %521 = vmatpush3.xpose.msk.msra.mxu1 %vm24_vm0, %v273_v2 }
  0x40   :  { %522 = vmatprep.subr.msk.mxu1 %vm24_vm0, %v272_v4 }
  0x41   :  { %92 = vmatpush1.xpose.msra.mxu0 %v37_v13 }
  0x42   :  { %93 = vmatprep.subr.mxu0 %v36_v14 }
  0x43   :  { %523 = vmatpush3.xpose.msk.msra.mxu1 %vm24_vm0, %v272_v4 }
  0x44   :  { %524 = vmatprep.subr.msk.mxu1 %vm24_vm0, %v271_v5 }
  0x45   :  { %94 = vmatpush1.xpose.msra.mxu0 %v35_v16 }
  0x46   :  { %95 = vmatprep.subr.mxu0 %v34_v17 }
  0x47   :  { %525 = vmatpush3.xpose.msk.msra.mxu1 %vm24_vm0, %v271_v5 }
  0x48   :  { %526 = vmatprep.subr.msk.mxu1 %vm24_vm0, %v270_v6 }
  0x49   :  { %96 = vmatpush1.xpose.msra.mxu0 %v33_v19 }
  0x4b   :  { %527 = vmatpush3.xpose.msk.msra.mxu1 %vm24_vm0, %v270_v6 }
  0x4c   :  { %528 = vmatprep.subr.msk.mxu1 %vm24_vm0, %v269_v9  ;;  %130 = vmatmul.mubr.f32.vlgmr.msra.gmra.mxu0 %v731_v44 }
  0x4d   :  { %134 = vmatprep.mubr.f32.mxu0 %v739_v46 }
  0x4f   :  { %529 = vmatpush3.xpose.msk.msra.mxu1 %vm24_vm0, %v269_v9 }
  0x50   :  { %530 = vmatprep.subr.msk.mxu1 %vm24_vm0, %v268_v12  ;;  %135 = vmatmul.mubr.f32.gmra.mxu0 %v756_v50 }
  0x53   :  { %531 = vmatpush3.xpose.msk.msra.mxu1 %vm24_vm0, %v268_v12 }
  0x54   :  { %532 = vmatprep.subr.msk.mxu1 %vm24_vm0, %v267_v15 }
  0x57   :  { %533 = vmatpush3.xpose.msk.msra.mxu1 %vm24_vm0, %v267_v15 }
  0x58   :  { %534 = vmatprep.subr.msk.mxu1 %vm24_vm0, %v266_v18 }
  0x5b   :  { %535 = vmatpush3.xpose.msk.msra.mxu1 %vm24_vm0, %v266_v18 }
  0x5c   :  { %536 = vmatprep.subr.msk.mxu1 %vm24_vm0, %v265_v20 }
  0x5f   :  { %537 = vmatpush3.xpose.msk.msra.mxu1 %vm24_vm0, %v265_v20 }
  0xe2   :  { %v482_v21 = vpop.f32.mrf.mxu1 }
  0xe4   :  { %v483_v23 = vpop.f32.mrf.mxu1 }
  0xe5   :  { %v484_v24 = vadd.f32 %v483_v23, %v482_v21 }
  0xe6   :  { %v485_v25 = vpop.f32.mrf.mxu1 }
  0xe7   :  { %v253_v26 = vadd.f32 %v484_v24, %v144_v22 }
  0xe8   :  { %v486_v28 = vpop.f32.mrf.mxu1 }
  0xe9   :  { %256 = vst.msk [vmem:[#allocation3] sm:$0xff] %vm24_vm0, %v253_v26  ;;  %v487_v29 = vadd.f32 %v486_v28, %v485_v25 }
  0xeb   :  { %v254_v30 = vadd.f32 %v487_v29, %v145_v27 }
  0xed   :  { %257 = vst.msk [vmem:[#allocation3 + $0x8] sm:$0xff] %vm24_vm0, %v254_v30 }
  0xf0   :  { %v261_v31 = vld [vmem:[#allocation3] sm:$0xff] }
  0xf1   :  { %v263_v32 = vmul.f32 8.0, %v261_v31 }
  0xf3   :  { %538 = vmatprep.mubr.msk.f32.mxu1 %vm24_vm0, %v263_v32 }
  0xf4   :  { %v262_v33 = vld [vmem:[#allocation3 + $0x8] sm:$0xff] }
  0xf5   :  { %v264_v34 = vmul.f32 8.0, %v262_v33 }
  0xf7   :  { %539 = vmatmul.mubr.msk.f32.vlgmr.msra.gmra.mxu1 %vm24_vm0, %v264_v34 }
 0x10c   :  { %v131_v35 = vpop.f32.mrf.mxu0 }
 0x10e   :  { %v133_v36 = vpop.f32.mrf.mxu0 }
 0x110   :  { %v136_v37 = vpop.f32.mrf.mxu0 }
 0x112   :  { %v138_v38 = vpop.f32.mrf.mxu0 }
 0x1b7   :  { %v540_v39 = vpop.f32.mrf.mxu1 }
 0x1b8   :  { %v413_v40 = vadd.f32 %v540_v39, %v136_v37 }
 0x1b9   :  { %v401_v41 = vpop.f32.mrf.mxu1 }
 0x1ba   :  { %415 = vst [vmem:[#allocation4 + $0x8] sm:$0xff] %v413_v40  ;;  %v412_v42 = vadd.f32 %v401_v41, %v131_v35 }
 0x1bc   :  { %414 = vst [vmem:[#allocation4] sm:$0xff] %v412_v42 }
 0x1bd   :  { %556 = shalt.err (!%p553_p4)
}
 0x1be   :  { %s569_s22 = smov 128   ;;  %s570_s23 = smov 8  }
 0x1bf   :  { %427 = dma.vmem_to_hbm [thread:$0]  %s422_s3, 256, %s905_s4, [#allocation5], %s569_s22, %s569_s22, %s570_s23  }
 0x1c0   :  { %565 = dma.done.wait [#allocation5], 256  }
 0x1c1   :  { %566 = vsyncadd [#allocation5], 4294967040 }
 0x1c2   :  { %431 = vsyncpa [#allocation5], 1 }

</bundles_post_ra>
